<compile_context>
chip_gen: v7x
topology: tpu7x:2x2x1
jax: 0.10.0
libtpu: 0.0.40
codegen_flags: <defaults>
</compile_context>

<pallas_src>
import functools

import jax
import jax.numpy as jnp
from jax.experimental import pallas as pl
from jax.experimental.pallas import tpu as pltpu


def _fcn_kernel(x_ref, w0_ref, b0_ref, wh_ref, bh_ref, we_ref, be_ref, o_ref,
                *, n_hidden_layers):
    # ---- First layer: (H, d1) @ (d1, TB) with tiny K=d1 -> VPU outer-product
    # accumulation (d1 broadcast multiply-adds), not an MXU matmul.
    x = x_ref[...]                    # (d1, TB)
    w0 = w0_ref[...]                  # (H, d1)
    d1 = x.shape[0]
    acc = w0[:, 0:1] * x[0:1, :]      # (H, 1) * (1, TB) -> (H, TB)
    for k in range(1, d1):
        acc = acc + w0[:, k:k + 1] * x[k:k + 1, :]
    h = jnp.tanh(acc + b0_ref[...])   # bias (H, 1) broadcasts across lanes (EUP tanh)

    # ---- Hidden layers: (H, H) @ (H, TB) on the MXU, tanh on the EUP.
    # Static unroll is fine at L-1 = 2.
    for l in range(n_hidden_layers):
        h = jnp.tanh(
            jnp.dot(wh_ref[l], h, preferred_element_type=jnp.float32)
            + bh_ref[l]
        )

    # ---- Output layer: (d2, H) @ (H, TB) + (d2, 1); lane-dense store.
    o_ref[...] = (
        jnp.dot(we_ref[...], h, preferred_element_type=jnp.float32)
        + be_ref[...]
    ).astype(o_ref.dtype)


def fcn_forward(x, params, *, tile_b=512):
    """FCN forward pass with a single fused Pallas TPU kernel.

    x: (B, N_INPUT) float32.
    params (PyTorch nn.Linear layout, i.e. (out_features, in_features)):
      w0 (H, D1), b0 (H, 1), wh (L-1, H, H), bh (L-1, H, 1),
      we (D2, H), be (D2, 1).
    Returns (B, N_OUTPUT) float32.
    """
    B, d1 = x.shape
    d2 = params["we"].shape[0]
    n_hidden_layers = params["wh"].shape[0]

    # Batch goes on the lane axis: transpose to (d1, B) and pad B up to a
    # multiple of tile_b (padded columns are independent, sliced off after).
    xT = x.T
    b_pad = pl.cdiv(B, tile_b) * tile_b
    if b_pad != B:
        xT = jnp.pad(xT, ((0, 0), (0, b_pad - B)))

    # Constant-index (fully VMEM-resident) spec for weights/biases.
    full = lambda shape: pl.BlockSpec(shape, lambda i: (0,) * len(shape))
    kernel = functools.partial(_fcn_kernel, n_hidden_layers=n_hidden_layers)

    outT = pl.pallas_call(
        kernel,
        out_shape=jax.ShapeDtypeStruct((d2, b_pad), jnp.float32),
        grid_spec=pltpu.PrefetchScalarGridSpec(
            num_scalar_prefetch=0,
            grid=(b_pad // tile_b,),
            in_specs=[
                pl.BlockSpec((d1, tile_b), lambda i: (0, i)),  # x tile (lane-dense)
                full(params["w0"].shape),
                full(params["b0"].shape),
                full(params["wh"].shape),
                full(params["bh"].shape),
                full(params["we"].shape),
                full(params["be"].shape),
            ],
            out_specs=pl.BlockSpec((d2, tile_b), lambda i: (0, i)),
        ),
        compiler_params=pltpu.CompilerParams(
            dimension_semantics=("parallel",)
        ),
    )(xT, params["w0"], params["b0"], params["wh"], params["bh"],
      params["we"], params["be"])

    return outT[:, :B].T


def init_fcn_params(key, n_input, n_output, n_hidden, n_layers):
    """Deterministic init mimicking PyTorch nn.Linear (uniform +/- 1/sqrt(fan_in)).
    Weights are stored in PyTorch layout: (out_features, in_features)."""
    ks = jax.random.split(key, 6)

    def uinit(k, shape, fan_in):
        bound = 1.0 / jnp.sqrt(jnp.float32(fan_in))
        return jax.random.uniform(k, shape, jnp.float32, -bound, bound)

    return {
        "w0": uinit(ks[0], (n_hidden, n_input), n_input),
        "b0": uinit(ks[1], (n_hidden, 1), n_input),
        "wh": uinit(ks[2], (n_layers - 1, n_hidden, n_hidden), n_hidden),
        "bh": uinit(ks[3], (n_layers - 1, n_hidden, 1), n_hidden),
        "we": uinit(ks[4], (n_output, n_hidden), n_hidden),
        "be": uinit(ks[5], (n_output, 1), n_hidden),
    }


def fcn_ref(x, params):
    """Pure-JAX reference with identical semantics to the PyTorch module."""
    h = jnp.tanh(x @ params["w0"].T + params["b0"][:, 0])
    for l in range(params["wh"].shape[0]):
        h = jnp.tanh(h @ params["wh"][l].T + params["bh"][l, :, 0])
    return h @ params["we"].T + params["be"][:, 0]


if __name__ == "__main__":
    # Shapes implied by the module: FCN(N_INPUT=4, N_OUTPUT=3, N_HIDDEN=32, N_LAYERS=3)
    N_INPUT, N_OUTPUT, N_HIDDEN, N_LAYERS = 4, 3, 32, 3
    BATCH = 1024          # small data (1024 x 4 f32)
    TILE_B = 512          # 256-aligned (v6e/v7x MXU); grid=(2,) -> both v7x TCs

    key = jax.random.PRNGKey(0)
    kx, kp = jax.random.split(key)
    x = jax.random.normal(kx, (BATCH, N_INPUT), jnp.float32)
    params = init_fcn_params(kp, N_INPUT, N_OUTPUT, N_HIDDEN, N_LAYERS)

    out = fcn_forward(x, params, tile_b=TILE_B)
    out = jax.block_until_ready(out)

    ref = fcn_ref(x, params)
    assert out.shape == (BATCH, N_OUTPUT)
    assert jnp.allclose(out, ref, atol=2e-5, rtol=2e-5)

    # Ragged-batch path (lane padding in the wrapper, same compiled kernel shapes).
    x_rag = jax.random.normal(jax.random.PRNGKey(1), (777, N_INPUT), jnp.float32)
    out_rag = jax.block_until_ready(fcn_forward(x_rag, params, tile_b=TILE_B))
    assert out_rag.shape == (777, N_OUTPUT)
    assert jnp.allclose(out_rag, fcn_ref(x_rag, params), atol=2e-5, rtol=2e-5)

    print("KERNEL_OK")
</pallas_src>

<mosaic_0001>
module attributes {stable_mosaic.version = 11 : i64} {
  func.func @_fcn_kernel(%arg0: i32, %arg1: memref<4x512xf32, #tpu.memory_space<vmem>>, %arg2: memref<32x4xf32, #tpu.memory_space<vmem>>, %arg3: memref<32x1xf32, #tpu.memory_space<vmem>>, %arg4: memref<2x32x32xf32, #tpu.memory_space<vmem>>, %arg5: memref<2x32x1xf32, #tpu.memory_space<vmem>>, %arg6: memref<3x32xf32, #tpu.memory_space<vmem>>, %arg7: memref<3x1xf32, #tpu.memory_space<vmem>>, %arg8: memref<3x512xf32, #tpu.memory_space<vmem>>) attributes {dimension_semantics = [#tpu.dimension_semantics<parallel>], iteration_bounds = array<i64: 2>, scalar_prefetch = 0 : i64, scratch_operands = 0 : i64, tpu.core_type = #tpu.core_type<tc>, window_params = [{transform_indices = @transform_0, window_bounds = array<i64: 4, 512>}, {pipeline_mode = #tpu.pipeline_mode<synchronous>, transform_indices = @transform_1, window_bounds = array<i64: 32, 4>}, {pipeline_mode = #tpu.pipeline_mode<synchronous>, transform_indices = @transform_2, window_bounds = array<i64: 32, 1>}, {pipeline_mode = #tpu.pipeline_mode<synchronous>, transform_indices = @transform_3, window_bounds = array<i64: 2, 32, 32>}, {pipeline_mode = #tpu.pipeline_mode<synchronous>, transform_indices = @transform_4, window_bounds = array<i64: 2, 32, 1>}, {pipeline_mode = #tpu.pipeline_mode<synchronous>, transform_indices = @transform_5, window_bounds = array<i64: 3, 32>}, {pipeline_mode = #tpu.pipeline_mode<synchronous>, transform_indices = @transform_6, window_bounds = array<i64: 3, 1>}, {transform_indices = @transform_7, window_bounds = array<i64: 3, 512>}]} {
    %c0 = arith.constant 0 : index
    %c0_0 = arith.constant 0 : index
    %0 = vector.load %arg1[%c0, %c0_0] : memref<4x512xf32, #tpu.memory_space<vmem>>, vector<4x512xf32>
    %c0_1 = arith.constant 0 : index
    %c0_2 = arith.constant 0 : index
    %1 = vector.load %arg2[%c0_1, %c0_2] : memref<32x4xf32, #tpu.memory_space<vmem>>, vector<32x4xf32>
    %2 = vector.extract_strided_slice %1 {offsets = [0, 0], sizes = [32, 1], strides = [1, 1]} : vector<32x4xf32> to vector<32x1xf32>
    %3 = vector.extract_strided_slice %0 {offsets = [0, 0], sizes = [1, 512], strides = [1, 1]} : vector<4x512xf32> to vector<1x512xf32>
    %4 = vector.broadcast %2 : vector<32x1xf32> to vector<32x512xf32>
    %5 = vector.broadcast %3 : vector<1x512xf32> to vector<32x512xf32>
    %6 = arith.mulf %4, %5 : vector<32x512xf32>
    %7 = vector.extract_strided_slice %1 {offsets = [0, 1], sizes = [32, 1], strides = [1, 1]} : vector<32x4xf32> to vector<32x1xf32>
    %8 = vector.extract_strided_slice %0 {offsets = [1, 0], sizes = [1, 512], strides = [1, 1]} : vector<4x512xf32> to vector<1x512xf32>
    %9 = vector.broadcast %7 : vector<32x1xf32> to vector<32x512xf32>
    %10 = vector.broadcast %8 : vector<1x512xf32> to vector<32x512xf32>
    %11 = arith.mulf %9, %10 : vector<32x512xf32>
    %12 = arith.addf %6, %11 : vector<32x512xf32>
    %13 = vector.extract_strided_slice %1 {offsets = [0, 2], sizes = [32, 1], strides = [1, 1]} : vector<32x4xf32> to vector<32x1xf32>
    %14 = vector.extract_strided_slice %0 {offsets = [2, 0], sizes = [1, 512], strides = [1, 1]} : vector<4x512xf32> to vector<1x512xf32>
    %15 = vector.broadcast %13 : vector<32x1xf32> to vector<32x512xf32>
    %16 = vector.broadcast %14 : vector<1x512xf32> to vector<32x512xf32>
    %17 = arith.mulf %15, %16 : vector<32x512xf32>
    %18 = arith.addf %12, %17 : vector<32x512xf32>
    %19 = vector.extract_strided_slice %1 {offsets = [0, 3], sizes = [32, 1], strides = [1, 1]} : vector<32x4xf32> to vector<32x1xf32>
    %20 = vector.extract_strided_slice %0 {offsets = [3, 0], sizes = [1, 512], strides = [1, 1]} : vector<4x512xf32> to vector<1x512xf32>
    %21 = vector.broadcast %19 : vector<32x1xf32> to vector<32x512xf32>
    %22 = vector.broadcast %20 : vector<1x512xf32> to vector<32x512xf32>
    %23 = arith.mulf %21, %22 : vector<32x512xf32>
    %24 = arith.addf %18, %23 : vector<32x512xf32>
    %c0_3 = arith.constant 0 : index
    %c0_4 = arith.constant 0 : index
    %25 = vector.load %arg3[%c0_3, %c0_4] : memref<32x1xf32, #tpu.memory_space<vmem>>, vector<32x1xf32>
    %26 = vector.broadcast %25 : vector<32x1xf32> to vector<32x512xf32>
    %27 = arith.addf %24, %26 : vector<32x512xf32>
    %28 = math.tanh %27 : vector<32x512xf32>
    %c0_5 = arith.constant 0 : index
    %c0_6 = arith.constant 0 : index
    %c0_7 = arith.constant 0 : index
    %29 = vector.load %arg4[%c0_5, %c0_6, %c0_7] : memref<2x32x32xf32, #tpu.memory_space<vmem>>, vector<1x32x32xf32>
    %30 = vector.shape_cast %29 : vector<1x32x32xf32> to vector<32x32xf32>
    %cst = arith.constant dense<0.000000e+00> : vector<32x512xf32>
    %31 = tpu.matmul %30, %28, %cst {dimension_numbers = #tpu.dot_dimension_numbers<[1], [0], [0], [1], [0, 0, 1, 1], [], []>} : vector<32x32xf32>, vector<32x512xf32>, vector<32x512xf32> -> vector<32x512xf32>
    %c0_8 = arith.constant 0 : index
    %c0_9 = arith.constant 0 : index
    %c0_10 = arith.constant 0 : index
    %32 = vector.load %arg5[%c0_8, %c0_9, %c0_10] : memref<2x32x1xf32, #tpu.memory_space<vmem>>, vector<1x32x1xf32>
    %33 = vector.shape_cast %32 : vector<1x32x1xf32> to vector<32x1xf32>
    %34 = vector.broadcast %33 : vector<32x1xf32> to vector<32x512xf32>
    %35 = arith.addf %31, %34 : vector<32x512xf32>
    %36 = math.tanh %35 : vector<32x512xf32>
    %c1 = arith.constant 1 : index
    %c0_11 = arith.constant 0 : index
    %c0_12 = arith.constant 0 : index
    %37 = vector.load %arg4[%c1, %c0_11, %c0_12] : memref<2x32x32xf32, #tpu.memory_space<vmem>>, vector<1x32x32xf32>
    %38 = vector.shape_cast %37 : vector<1x32x32xf32> to vector<32x32xf32>
    %cst_13 = arith.constant dense<0.000000e+00> : vector<32x512xf32>
    %39 = tpu.matmul %38, %36, %cst_13 {dimension_numbers = #tpu.dot_dimension_numbers<[1], [0], [0], [1], [0, 0, 1, 1], [], []>} : vector<32x32xf32>, vector<32x512xf32>, vector<32x512xf32> -> vector<32x512xf32>
    %c1_14 = arith.constant 1 : index
    %c0_15 = arith.constant 0 : index
    %c0_16 = arith.constant 0 : index
    %40 = vector.load %arg5[%c1_14, %c0_15, %c0_16] : memref<2x32x1xf32, #tpu.memory_space<vmem>>, vector<1x32x1xf32>
    %41 = vector.shape_cast %40 : vector<1x32x1xf32> to vector<32x1xf32>
    %42 = vector.broadcast %41 : vector<32x1xf32> to vector<32x512xf32>
    %43 = arith.addf %39, %42 : vector<32x512xf32>
    %44 = math.tanh %43 : vector<32x512xf32>
    %c0_17 = arith.constant 0 : index
    %c0_18 = arith.constant 0 : index
    %45 = vector.load %arg6[%c0_17, %c0_18] : memref<3x32xf32, #tpu.memory_space<vmem>>, vector<3x32xf32>
    %cst_19 = arith.constant dense<0.000000e+00> : vector<3x512xf32>
    %46 = tpu.matmul %45, %44, %cst_19 {dimension_numbers = #tpu.dot_dimension_numbers<[1], [0], [0], [1], [0, 0, 1, 1], [], []>} : vector<3x32xf32>, vector<32x512xf32>, vector<3x512xf32> -> vector<3x512xf32>
    %c0_20 = arith.constant 0 : index
    %c0_21 = arith.constant 0 : index
    %47 = vector.load %arg7[%c0_20, %c0_21] : memref<3x1xf32, #tpu.memory_space<vmem>>, vector<3x1xf32>
    %48 = vector.broadcast %47 : vector<3x1xf32> to vector<3x512xf32>
    %49 = arith.addf %46, %48 : vector<3x512xf32>
    %c0_22 = arith.constant 0 : index
    %c0_23 = arith.constant 0 : index
    %50 = vector.load %arg8[%c0_22, %c0_23] : memref<3x512xf32, #tpu.memory_space<vmem>>, vector<3x512xf32>
    tpu.vector_store %arg8[%c0_22, %c0_23], %49 {strides = array<i32>} : memref<3x512xf32, #tpu.memory_space<vmem>>, vector<3x512xf32>,
    return
  }
  func.func @transform_0(%arg0: i32) -> (i32, i32) {
    %c0_i32 = arith.constant 0 : i32
    %c0_i32_0 = arith.constant 0 : i32
    return %c0_i32, %arg0 : i32, i32
  }
  func.func @transform_1(%arg0: i32) -> (i32, i32) {
    %c0_i32 = arith.constant 0 : i32
    %c0_i32_0 = arith.constant 0 : i32
    %c0_i32_1 = arith.constant 0 : i32
    return %c0_i32, %c0_i32_0 : i32, i32
  }
  func.func @transform_2(%arg0: i32) -> (i32, i32) {
    %c0_i32 = arith.constant 0 : i32
    %c0_i32_0 = arith.constant 0 : i32
    %c0_i32_1 = arith.constant 0 : i32
    return %c0_i32, %c0_i32_0 : i32, i32
  }
  func.func @transform_3(%arg0: i32) -> (i32, i32, i32) {
    %c0_i32 = arith.constant 0 : i32
    %c0_i32_0 = arith.constant 0 : i32
    %c0_i32_1 = arith.constant 0 : i32
    %c0_i32_2 = arith.constant 0 : i32
    return %c0_i32, %c0_i32_0, %c0_i32_1 : i32, i32, i32
  }
  func.func @transform_4(%arg0: i32) -> (i32, i32, i32) {
    %c0_i32 = arith.constant 0 : i32
    %c0_i32_0 = arith.constant 0 : i32
    %c0_i32_1 = arith.constant 0 : i32
    %c0_i32_2 = arith.constant 0 : i32
    return %c0_i32, %c0_i32_0, %c0_i32_1 : i32, i32, i32
  }
  func.func @transform_5(%arg0: i32) -> (i32, i32) {
    %c0_i32 = arith.constant 0 : i32
    %c0_i32_0 = arith.constant 0 : i32
    %c0_i32_1 = arith.constant 0 : i32
    return %c0_i32, %c0_i32_0 : i32, i32
  }
  func.func @transform_6(%arg0: i32) -> (i32, i32) {
    %c0_i32 = arith.constant 0 : i32
    %c0_i32_0 = arith.constant 0 : i32
    %c0_i32_1 = arith.constant 0 : i32
    return %c0_i32, %c0_i32_0 : i32, i32
  }
  func.func @transform_7(%arg0: i32) -> (i32, i32) {
    %c0_i32 = arith.constant 0 : i32
    %c0_i32_0 = arith.constant 0 : i32
    return %c0_i32, %arg0 : i32, i32
  }
}

</mosaic_0001>

<bundles_post_ra>
// kernel: tpu_custom_call.1
= control target key start
LH: loop header
LB: loop body
LE: loop exit
PB: predicated region body
PF: predicated region fallthrough
CT: control target
= control target key end

     0   :  { %12 = vsyncpa [#allocation3], 0  ;;  %s2050_s0 = inlined_call_operand.vmem [shape: f32[4,1024], index: 0, kind: input, shape index: {}]   ;;  %s2051_s1 = inlined_call_operand.vmem [shape: f32[32,4], index: 1, kind: input, shape index: {}]   ;;  %s2052_s2 = inlined_call_operand.vmem [shape: f32[32,1], index: 2, kind: input, shape index: {}]   ;;  %s2053_s3 = inlined_call_operand.vmem [shape: f32[2,32,32], index: 3, kind: input, shape index: {}]   ;;  %s2054_s4 = inlined_call_operand.vmem [shape: f32[2,32,1], index: 4, kind: input, shape index: {}]   ;;  %s2055_s5 = inlined_call_operand.vmem [shape: f32[3,32], index: 5, kind: input, shape index: {}]   ;;  %s2056_s6 = inlined_call_operand.vmem [shape: f32[3,1], index: 6, kind: input, shape index: {}]   ;;  %s2057_s7 = inlined_call_operand.hbm [shape: f32[3,1024], index: 7, kind: output, shape index: {}]  }
   0x1   :  { %14 = vsyncpa [#allocation3 + $0x1], 0  ;;  %s1723_s24 = smov 0   ;;  %s1725_s25 = smov 0  }
   0x2   :  { %s1727_s26 = smov 0   ;;  %s1729_s27 = smov 0  }
   0x3 LB: > { %s1744_s28 = sadd.s32 4294967295, %s1675_s27   ;;  %s1375_s29 = sadd.s32 4294967294, %s1675_s27   ;;  %s1675_s27 = sphi %s1729_s27, %s2084_s27   ;;  %s1671_s26 = sphi %s1727_s26, %s2083_s26   ;;  %s1667_s25 = sphi %s1725_s25, %s2082_s25   ;;  %s1663_s24 = sphi %s1723_s24, %s2081_s24  }
   0x4   : > { %s1748_s30 = sadd.s32 1, %s1675_s27   ;;  %s179_s8 = sadd.s32 1, %s1671_s26 }
   0x5   : > { %s176_s9 = ssub.s32 %s1675_s27, %s1748_s30  ;;  %p189_p0 = scmp.ne.s32.totalorder %s1671_s26, %s1667_s25 }
   0x6   : > { %p177_p1 = scmp.eq.s32.totalorder %s176_s9, 0  ;;  %p190_p2 = scmp.eq.s32.totalorder %s1744_s28, 1 }
   0x7   : > { %p195_p3 = scmp.ne.s32.totalorder %s1667_s25, %s1663_s24  ;;  %p196_p4 = scmp.eq.s32.totalorder %s1375_s29, 1 }
   0x8   : > { %s1759_s10 = scalar_select %p177_p1, %s1671_s26, %s179_s8  }
   0x9   : > { %p1761_p5 = por %p190_p2, %p189_p0  ;;  %p1765_p6 = por %p196_p4, %p195_p3 }
   0xa   : > { %p1378_p7 = scmp.ge.s32.totalorder %s1675_s27, 1  ;;  %p241_p8 = scmp.lt.s32.totalorder %s1675_s27, 3 }
   0xc   : > { %p242_p9 = pnand %p1378_p7, %p241_p8 }
   0xe   : > { %245 = sbr.rel (%p242_p9) target bundleno = 946 (0x3b2), region = 48 }
  0x15   : > { %v282_v0 = vld [vmem:[%s2051_s1] sm:$0xff]  ;;  %v1677_v1 = vmov 3   ;;  %v1678_v2 = vmov 1   ;;  %v283_v3 = vld [vmem:[%s2051_s1 + $0x8] sm:$0xff]  ;;  %v1679_v4 = vmov 2   ;;  %v285_v5 = vld [vmem:[%s2051_s1 + $0x18] sm:$0xff]  ;;  %v308_v22 = vlaneseq }
  0x16   : > { %1510 = vset.pattern.permute.xlu0 %v1677_v1  ;;  %1506 = vset.pattern.permute.xlu1 %v1678_v2  ;;  %v284_v6 = vld [vmem:[%s2051_s1 + $0x10] sm:$0xff]  ;;  %v1680_v7 = vmov 0   ;;  %v612_v8 = vld [vmem:[%s2052_s2] sm:$0xff]  ;;  %v615_v9 = vld [vmem:[%s2052_s2 + $0x18] sm:$0xff]  ;;  %v2058_v21 = vmov 0.0   ;;  %s1380_s19 = sshll.u32 %s1744_s28, 2 }
  0x17   : > { %529 = vperm.xlu0 %1510, %v282_v0   ;;  %361 = vperm.xlu1 %1506, %v282_v0   ;;  %v673_v10 = vld [vmem:[%s2054_s4 + $0x8] sm:$0xff]  ;;  %v675_v11 = vld [vmem:[%s2054_s4 + $0x18] sm:$0xff]  ;;  %v614_v15 = vld [vmem:[%s2052_s2 + $0x10] sm:$0xff]  ;;  %p274_p10 = scmp.lt.s32.totalorder %s1380_s19, 7  ;;  %v309_v25 = vshrl.u32 %v308_v22, 7  ;;  %vm696_vm0 = vcmask 261120  }
  0x18   : > { %v1395_v12 = vld [vmem:[%s2054_s4 + $0x28] sm:$0xff]  ;;  %v1397_v13 = vld [vmem:[%s2054_s4 + $0x38] sm:$0xff]  ;;  %v672_v16 = vld [vmem:[%s2054_s4] sm:$0xff]  ;;  %773 = vmatprep.mubr.f32.mxu0 %v2058_v21  ;;  %862 = vmatprep.mubr.f32.mxu1 %v2058_v21  ;;  %s270_s14 = sand.u32 1, %s1667_s25   ;;  %s1413_s16 = sshll.u32 %s1744_s28, 8 }
  0x19   : > { %v613_v14 = vld [vmem:[%s2052_s2 + $0x8] sm:$0xff]  ;;  %v674_v17 = vld [vmem:[%s2054_s4 + $0x10] sm:$0xff]  ;;  %v1394_v18 = vld [vmem:[%s2054_s4 + $0x20] sm:$0xff]  ;;  %s2086_s19 = smov (!%p274_p10, %s1380_s19), 7  ;;  %v378_v28 = vsub.s32 1, %v309_v25  ;;  %v382_v29 = vsub.s32 5, %v309_v25  ;;  %s2008_s21 = scalar_lea.hbm %s2057_s7, %s1413_s16 }
  0x1a   : > { %v1396_v19 = vld [vmem:[%s2054_s4 + $0x30] sm:$0xff]  ;;  %v1140_v20 = vld [vmem:[%s2056_s6] sm:$0x7]  ;;  %s1381_s20 = sshll.u32 %s2086_s19, 2  ;;  %v546_v31 = vsub.s32 3, %v309_v25  ;;  %v550_v32 = vsub.s32 7, %v309_v25 }
  0x1b   : > { %1511 = vset.pattern.permute.xlu0 %v1679_v4  ;;  %365 = vperm.xlu1 %1506, %v283_v3   ;;  %s277_s23 = scalar_lea.vmem %s2050_s0, %s1381_s20  ;;  %v462_v36 = vsub.s32 2, %v309_v25  ;;  %v466_v37 = vsub.s32 6, %v309_v25  ;;  %v310_v38 = vsub.s32 0, %v309_v25  ;;  %v314_v41 = vsub.s32 4, %v309_v25  ;;  %s1379_s15 = sshll.u32 %s270_s14, 4 }
  0x1c   : > { %445 = vperm.xlu0 %1511, %v282_v0   ;;  %v280_v30 = vld [vmem:[%s277_s23] sm:$0xff]  ;;  %v281_v35 = vld [vmem:[%s277_s23 + $0x8] sm:$0xff]  ;;  %s272_s17 = scalar_lea.vmem [#allocation2], %s1379_s15  ;;  %s1302_s22 = scalar_lea.sflag [#allocation3], %s270_s14 }
  0x1d   : > { %v379_v39 = vrot.slane %v280_v30, %v378_v28  ;;  %v383_v40 = vrot.slane %v280_v30, %v382_v29  ;;  %v387_v42 = vrot.slane %v281_v35, %v378_v28  ;;  %v391_v43 = vrot.slane %v281_v35, %v382_v29  ;;  %s1316_s18 = sshll.u32 %s272_s17, 4  ;;  %s1682_s28 = smov [#allocation2]   ;;  %s2010_s18 = int_to_ptr.vmem [resolvable:$true] %s1316_s18 }
  0x1e   : > { %v547_v44 = vrot.slane %v280_v30, %v546_v31  ;;  %v551_v45 = vrot.slane %v280_v30, %v550_v32  ;;  %v555_v46 = vrot.slane %v281_v35, %v546_v31  ;;  %v559_v47 = vrot.slane %v281_v35, %v550_v32  ;;  %s1613_s23 = scalar_lea.vmem %s2010_s18, 256  ;;  %s1617_s29 = sshll.u32 %s1682_s28, 4  ;;  %s1618_s29 = int_to_ptr.vmem [resolvable:$false] %s1617_s29 }
  0x1f   : > { %1507 = vset.pattern.permute.xlu1 %v1679_v4  ;;  %v463_v48 = vrot.slane %v280_v30, %v462_v36  ;;  %v467_v49 = vrot.slane %v280_v30, %v466_v37  ;;  %v471_v52 = vrot.slane %v281_v35, %v462_v36  ;;  %v475_v53 = vrot.slane %v281_v35, %v466_v37  ;;  %p1614_p11 = scmp.ne.s32.totalorder %s2010_s18, %s1613_s23  ;;  %s1619_s8 = scalar_lea.vmem %s1618_s29, 512 }
  0x20   : > { %457 = vperm.xlu0 %1511, %v285_v5   ;;  %449 = vperm.xlu1 %1507, %v283_v3   ;;  %v311_v54 = vrot.slane %v280_v30, %v310_v38  ;;  %v319_v55 = vrot.slane %v281_v35, %v310_v38  ;;  %v1834_v56 = vrot.slane %v379_v39, %v378_v28  ;;  %p1620_p0 = scmp.lt.s32.totalorder %s2010_s18, %s1618_s29  ;;  %p1621_p1 = scmp.lt.s32.totalorder %s1619_s8, %s1613_s23 }
  0x21   : > { %v1836_v57 = vrot.slane %v383_v40, %v378_v28  ;;  %v315_v58 = vrot.slane %v280_v30, %v314_v41  ;;  %v323_v59 = vrot.slane %v281_v35, %v314_v41  ;;  %v1838_v60 = vrot.slane %v387_v42, %v378_v28  ;;  %p1615_p12 = pnand %p1614_p11, %p1761_p5 }
  0x22   : > { %v1840_v61 = vrot.slane %v391_v43, %v378_v28  ;;  %v1842_v62 = vrot.slane %v547_v44, %v546_v31  ;;  %v1844_v63 = vrot.slane %v551_v45, %v546_v31  ;;  %p1622_p2 = por %p1621_p1, %p1620_p0 }
  0x23   : > { %p1616_p13 = pneg %p1615_p12 }
  0x24   : > { %1514 = vset.pattern.permute.xlu0 %v1680_v7  ;;  %1508 = vset.pattern.permute.xlu1 %v1680_v7 }
  0x25   : > { %288 = vperm.xlu0 %1514, %v282_v0   ;;  %298 = vperm.xlu1 %1508, %v284_v6   ;;  %v1846_v0 = vrot.slane %v555_v46, %v546_v31  ;;  %p1623_p3 = pnand %p1622_p2, %p1616_p13 }
  0x29   : > { %293 = vperm.xlu0 %1514, %v283_v3   ;;  %1509 = vset.pattern.permute.xlu1 %v1678_v2  ;;  %v1850_v2 = vrot.slane %v463_v48, %v462_v36 }
  0x2a   : > { %369 = vperm.xlu1 %1509, %v284_v6  }
  0x2b   : > { %2066 = vst [vmem:[#allocation5_spill] sm:$0xff] %v1850_v2 }
  0x2d   : > { %303 = vperm.xlu0 %1514, %v285_v5  }
  0x2e   : > { %373 = vperm.xlu1 %1509, %v285_v5  }
  0x31   : > { %618 = vperm.xlu0 %1514, %v612_v8  }
  0x32   : > { %1512 = vset.pattern.permute.xlu1 %v1677_v1 }
  0x33   : > { %533 = vperm.xlu1 %1512, %v283_v3   ;;  %v1852_v3 = vrot.slane %v467_v49, %v462_v36 }
  0x35   : > { %633 = vperm.xlu0 %1514, %v615_v9   ;;  %2067 = vst [vmem:[#allocation6_spill] sm:$0xff] %v1852_v3 }
  0x37   : > { %1513 = vset.pattern.permute.xlu1 %v1679_v4  ;;  %v1854_v4 = vrot.slane %v471_v52, %v462_v36 }
  0x38   : > { %453 = vperm.xlu1 %1513, %v284_v6  }
  0x39   : > { %683 = vperm.xlu0 %1514, %v673_v10   ;;  %2068 = vst [vmem:[#allocation7_spill] sm:$0xff] %v1854_v4 }
  0x3c   : > { %1515 = vset.pattern.permute.xlu1 %v1677_v1  ;;  %v1848_v1 = vrot.slane %v559_v47, %v546_v31 }
  0x3d   : > { %693 = vperm.xlu0 %1514, %v675_v11   ;;  %537 = vperm.xlu1 %1515, %v284_v6   ;;  %v331_v6 = vrot.slane %v311_v54, %v310_v38  ;;  %v335_v11 = vrot.slane %v315_v58, %v310_v38 }
  0x41   : > { %920 = vperm.xlu0 %1514, %v1395_v12   ;;  %541 = vperm.xlu1 %1515, %v285_v5   ;;  %v1856_v5 = vrot.slane %v475_v53, %v462_v36  ;;  %v343_v12 = vrot.slane %v323_v59, %v310_v38 }
  0x43   : > { %2069 = vst [vmem:[#allocation8_spill] sm:$0xff] %v1856_v5 }
  0x45   : > { %930 = vperm.xlu0 %1514, %v1397_v13   ;;  %1516 = vset.pattern.permute.xlu1 %v1680_v7  ;;  %v339_v7 = vrot.slane %v319_v55, %v310_v38 }
  0x46   : > { %623 = vperm.xlu1 %1516, %v613_v14  }
  0x4a   : > { %628 = vperm.xlu1 %1516, %v614_v15  }
  0x4e   : > { %678 = vperm.xlu1 %1516, %v672_v16  }
  0x52   : > { %688 = vperm.xlu1 %1516, %v674_v17  }
  0x56   : > { %915 = vperm.xlu1 %1516, %v1394_v18  }
  0x5a   : > { %925 = vperm.xlu1 %1516, %v1396_v19  }
  0x5e   : > { %1143 = vperm.xlu1 %1516, %v1140_v20  }
  0x96   : > { %v362_v23 = vpop.permute.xlu1 %361  ;;  %v530_v24 = vpop.permute.xlu0 %529 }
  0x97   : > { %v412_v9 = vmul.f32 %v1834_v56, %v362_v23  ;;  %v413_v10 = vmul.f32 %v1836_v57, %v362_v23  ;;  %v414_v14 = vmul.f32 %v1838_v60, %v362_v23  ;;  %v415_v15 = vmul.f32 %v1840_v61, %v362_v23 }
  0x98   : > { %v580_v16 = vmul.f32 %v1842_v62, %v530_v24  ;;  %v1864_v17 = vmul.f32 %v1844_v63, %v530_v24  ;;  %v1867_v18 = vmul.f32 %v1846_v0, %v530_v24  ;;  %v1870_v19 = vmul.f32 %v1848_v1, %v530_v24 }
  0x9a   : > { %v366_v26 = vpop.permute.xlu1 %365 }
  0x9b   : > { %v1825_v27 = vpop.permute.xlu0 %445  ;;  %v416_v20 = vmul.f32 %v1834_v56, %v366_v26  ;;  %v417_v22 = vmul.f32 %v1836_v57, %v366_v26  ;;  %v418_v25 = vmul.f32 %v1838_v60, %v366_v26  ;;  %v419_v28 = vmul.f32 %v1840_v61, %v366_v26 }
  0x9c   : > { %v496_v23 = vmul.f32 %v1850_v2, %v1825_v27  ;;  %v497_v31 = vmul.f32 %v1852_v3, %v1825_v27  ;;  %v498_v24 = vmul.f32 %v1854_v4, %v1825_v27  ;;  %v499_v32 = vmul.f32 %v1856_v5, %v1825_v27 }
  0x9f   : > { %v1830_v33 = vpop.permute.xlu1 %449  ;;  %v1832_v34 = vpop.permute.xlu0 %457 }
  0xa0   : > { %v1886_v36 = vmul.f32 %v1850_v2, %v1830_v33  ;;  %v1890_v26 = vmul.f32 %v1852_v3, %v1830_v33  ;;  %v1894_v39 = vmul.f32 %v1854_v4, %v1830_v33  ;;  %v1898_v40 = vmul.f32 %v1856_v5, %v1830_v33 }
  0xa1   : > { %v508_v27 = vmul.f32 %v1850_v2, %v1832_v34  ;;  %v509_v41 = vmul.f32 %v1852_v3, %v1832_v34  ;;  %v510_v43 = vmul.f32 %v1854_v4, %v1832_v34  ;;  %v511_v44 = vmul.f32 %v1856_v5, %v1832_v34 }
  0xa2   : > { %2070 = vst [vmem:[#allocation9_spill] sm:$0xff] %v1890_v26  ;;  %2071 = vst [vmem:[#allocation10_spill] sm:$0xff] %v1894_v39 }
  0xa3   : > { %2072 = vst [vmem:[#allocation11_spill] sm:$0xff] %v1898_v40 }
  0xa4   : > { %v289_v50 = vpop.permute.xlu0 %288  ;;  %v299_v51 = vpop.permute.xlu1 %298 }
  0xa5   : > { %v344_v29 = vmul.f32 %v331_v6, %v289_v50  ;;  %v345_v35 = vmul.f32 %v335_v11, %v289_v50  ;;  %v346_v37 = vmul.f32 %v339_v7, %v289_v50  ;;  %v347_v38 = vmul.f32 %v343_v12, %v289_v50 }
  0xa6   : > { %v352_v46 = vmul.f32 %v331_v6, %v299_v51  ;;  %v353_v48 = vmul.f32 %v335_v11, %v299_v51  ;;  %v354_v49 = vmul.f32 %v339_v7, %v299_v51  ;;  %v355_v33 = vmul.f32 %v343_v12, %v299_v51 }
  0xa7   : > { %v428_v45 = vadd.f32 %v412_v9, %v344_v29  ;;  %v429_v47 = vadd.f32 %v413_v10, %v345_v35  ;;  %v430_v52 = vadd.f32 %v414_v14, %v346_v37  ;;  %v431_v53 = vadd.f32 %v415_v15, %v347_v38 }
  0xa8   : > { %v294_v13 = vpop.permute.xlu0 %293 }
  0xa9   : > { %v370_v8 = vpop.permute.xlu1 %369  ;;  %v348_v54 = vmul.f32 %v331_v6, %v294_v13  ;;  %v512_v10 = vadd.f32 %v496_v23, %v428_v45  ;;  %v349_v29 = vmul.f32 %v335_v11, %v294_v13  ;;  %v350_v35 = vmul.f32 %v339_v7, %v294_v13 }
  0xaa   : > { %v351_v51 = vmul.f32 %v343_v12, %v294_v13  ;;  %v513_v5 = vadd.f32 %v497_v31, %v429_v47  ;;  %v420_v14 = vmul.f32 %v1834_v56, %v370_v8  ;;  %v422_v15 = vmul.f32 %v1838_v60, %v370_v8 }
  0xab   : > { %v423_v37 = vmul.f32 %v1840_v61, %v370_v8  ;;  %v514_v39 = vadd.f32 %v498_v24, %v430_v52  ;;  %v515_v26 = vadd.f32 %v499_v32, %v431_v53  ;;  %v434_v13 = vadd.f32 %v418_v25, %v350_v35 }
  0xac   : > { %v304_v42 = vpop.permute.xlu0 %303  ;;  %v435_v31 = vadd.f32 %v419_v28, %v351_v51 }
  0xad   : > { %v374_v30 = vpop.permute.xlu1 %373  ;;  %v356_v55 = vmul.f32 %v331_v6, %v304_v42  ;;  %v357_v58 = vmul.f32 %v335_v11, %v304_v42  ;;  %v358_v59 = vmul.f32 %v339_v7, %v304_v42  ;;  %v359_v21 = vmul.f32 %v343_v12, %v304_v42 }
  0xae   : > { %v424_v3 = vmul.f32 %v1834_v56, %v374_v30  ;;  %v425_v4 = vmul.f32 %v1836_v57, %v374_v30  ;;  %v426_v34 = vmul.f32 %v1838_v60, %v374_v30  ;;  %v427_v9 = vmul.f32 %v1840_v61, %v374_v30 }
  0xaf   : > { %v421_v6 = vmul.f32 %v1836_v57, %v370_v8  ;;  %v432_v42 = vadd.f32 %v416_v20, %v348_v54  ;;  %v596_v7 = vadd.f32 %v580_v16, %v512_v10  ;;  %v433_v12 = vadd.f32 %v417_v22, %v349_v29  ;;  %v2078_v10 = vld [vmem:[#allocation7_spill] sm:$0xff] }
  0xb0   : > { %v440_v2 = vadd.f32 %v424_v3, %v356_v55  ;;  %v619_v40 = vpop.permute.xlu0 %618  ;;  %v441_v30 = vadd.f32 %v425_v4, %v357_v58  ;;  %v442_v23 = vadd.f32 %v426_v34, %v358_v59  ;;  %v443_v11 = vadd.f32 %v427_v9, %v359_v21  ;;  %v2077_v34 = vld [vmem:[#allocation6_spill] sm:$0xff] }
  0xb1   : > { %v597_v56 = vadd.f32 %v1864_v17, %v513_v5  ;;  %v436_v57 = vadd.f32 %v420_v14, %v352_v46  ;;  %v437_v45 = vadd.f32 %v421_v6, %v353_v48  ;;  %v438_v60 = vadd.f32 %v422_v15, %v354_v49 }
  0xb2   : > { %v534_v50 = vpop.permute.xlu1 %533  ;;  %v636_v47 = vadd.f32 %v619_v40, %v596_v7  ;;  %v1917_v61 = vadd.f32 %v423_v37, %v355_v33  ;;  %v598_v3 = vadd.f32 %v1867_v18, %v514_v39  ;;  %v599_v8 = vadd.f32 %v1870_v19, %v515_v26  ;;  %v2073_v26 = vld [vmem:[#allocation9_spill] sm:$0xff]  ;;  %v2074_v39 = vld [vmem:[#allocation10_spill] sm:$0xff] }
  0xb3   : > { %v637_v20 = vadd.f32 %v619_v40, %v597_v56  ;;  %v524_v24 = vadd.f32 %v508_v27, %v440_v2  ;;  %v525_v21 = vadd.f32 %v509_v41, %v441_v30  ;;  %v526_v16 = vadd.f32 %v510_v43, %v442_v23  ;;  %v2075_v41 = vld [vmem:[#allocation11_spill] sm:$0xff]  ;;  %v2076_v33 = vld [vmem:[#allocation5_spill] sm:$0xff] }
  0xb4   : > { %v527_v22 = vadd.f32 %v511_v44, %v443_v11  ;;  %v638_v25 = vadd.f32 %v619_v40, %v598_v3  ;;  %v639_v28 = vadd.f32 %v619_v40, %v599_v8  ;;  %v584_v5 = vmul.f32 %v1842_v62, %v534_v50  ;;  %v634_v59 = vpop.permute.xlu0 %633 }
  0xb5   : > { %v585_v17 = vmul.f32 %v1844_v63, %v534_v50  ;;  %1517 = vtanh.f32 %v636_v47  ;;  %v586_v32 = vmul.f32 %v1846_v0, %v534_v50  ;;  %v587_v46 = vmul.f32 %v1848_v1, %v534_v50 }
  0xb6   : > { %v516_v18 = vadd.f32 %v1886_v36, %v432_v42  ;;  %1519 = vtanh.f32 %v637_v20  ;;  %v517_v2 = vadd.f32 %v2073_v26, %v433_v12  ;;  %v518_v27 = vadd.f32 %v2074_v39, %v434_v13  ;;  %v2079_v42 = vld [vmem:[#allocation8_spill] sm:$0xff] }
  0xb7   : > { %v454_v38 = vpop.permute.xlu1 %453  ;;  %v519_v43 = vadd.f32 %v2075_v41, %v435_v31  ;;  %1521 = vtanh.f32 %v638_v25 }
  0xb8   : > { %v504_v50 = vmul.f32 %v2076_v33, %v454_v38  ;;  %v600_v36 = vadd.f32 %v584_v5, %v516_v18  ;;  %v601_v52 = vadd.f32 %v585_v17, %v517_v2  ;;  %1523 = vtanh.f32 %v639_v28 }
  0xb9   : > { %v505_v9 = vmul.f32 %v2077_v34, %v454_v38  ;;  %v506_v29 = vmul.f32 %v2078_v10, %v454_v38  ;;  %v602_v35 = vadd.f32 %v586_v32, %v518_v27  ;;  %v507_v30 = vmul.f32 %v2079_v42, %v454_v38 }
  0xba   : > { %v603_v7 = vadd.f32 %v587_v46, %v519_v43  ;;  %v520_v12 = vadd.f32 %v504_v50, %v436_v57 }
  0xbb   : > { %v521_v56 = vadd.f32 %v505_v9, %v437_v45  ;;  %v522_v8 = vadd.f32 %v506_v29, %v438_v60 }
  0xbc   : > { %v538_v4 = vpop.permute.xlu1 %537 }
  0xbd   : > { %v588_v51 = vmul.f32 %v1842_v62, %v538_v4  ;;  %v589_v23 = vmul.f32 %v1844_v63, %v538_v4  ;;  %v590_v13 = vmul.f32 %v1846_v0, %v538_v4  ;;  %v591_v47 = vmul.f32 %v1848_v1, %v538_v4 }
  0xbf   : > { %v1518_v3 = vpop.eup %1517  ;;  %v604_v38 = vadd.f32 %v588_v51, %v520_v12 }
  0xc0   : > { %v542_v19 = vpop.permute.xlu1 %541 }
  0xc1   : > { %v592_v40 = vmul.f32 %v1842_v62, %v542_v19  ;;  %v593_v44 = vmul.f32 %v1844_v63, %v542_v19  ;;  %v594_v48 = vmul.f32 %v1846_v0, %v542_v19  ;;  %v595_v49 = vmul.f32 %v1848_v1, %v542_v19 }
  0xc2   : > { %v523_v63 = vadd.f32 %v507_v30, %v1917_v61  ;;  %v606_v0 = vadd.f32 %v590_v13, %v522_v8 }
  0xc3   : > { %v608_v53 = vadd.f32 %v592_v40, %v524_v24  ;;  %v609_v54 = vadd.f32 %v593_v44, %v525_v21  ;;  %v610_v55 = vadd.f32 %v594_v48, %v526_v16  ;;  %v611_v58 = vadd.f32 %v595_v49, %v527_v22  ;;  %v1520_v21 = vpop.eup %1519 }
  0xc4   : > { %v605_v16 = vadd.f32 %v589_v23, %v521_v56  ;;  %v1522_v45 = vpop.eup %1521  ;;  %v607_v1 = vadd.f32 %v591_v47, %v523_v63 }
  0xc5   : > { %v648_v14 = vadd.f32 %v634_v59, %v608_v53  ;;  %v649_v6 = vadd.f32 %v634_v59, %v609_v54  ;;  %v650_v15 = vadd.f32 %v634_v59, %v610_v55  ;;  %v624_v37 = vpop.permute.xlu1 %623  ;;  %v651_v11 = vadd.f32 %v634_v59, %v611_v58  ;;  %v1524_v60 = vpop.eup %1523  ;;  %v669_v54 = vld [vmem:[%s2053_s3 + $0x8] sm:$0xff]  ;;  %v670_v55 = vld [vmem:[%s2053_s3 + $0x10] sm:$0xff]  ;;  %v671_v58 = vld [vmem:[%s2053_s3 + $0x18] sm:$0xff] }
  0xc6   : > { %v640_v31 = vadd.f32 %v624_v37, %v600_v36  ;;  %v641_v62 = vadd.f32 %v624_v37, %v601_v52  ;;  %v642_v20 = vadd.f32 %v624_v37, %v602_v35  ;;  %v643_v57 = vadd.f32 %v624_v37, %v603_v7  ;;  %v668_v52 = vld [vmem:[%s2053_s3] sm:$0xff] }
  0xc7   : > { %1525 = vtanh.f32 %v648_v14  ;;  %v2080_v53 = vmov 0.0  }
  0xc8   : > { %1527 = vtanh.f32 %v649_v6  ;;  %v684_v6 = vpop.permute.xlu0 %683 }
  0xc9   : > { %1529 = vtanh.f32 %v650_v15  ;;  %v629_v24 = vpop.permute.xlu1 %628 }
  0xca   : > { %1531 = vtanh.f32 %v651_v11  ;;  %v644_v22 = vadd.f32 %v629_v24, %v604_v38  ;;  %v645_v4 = vadd.f32 %v629_v24, %v605_v16  ;;  %v646_v25 = vadd.f32 %v629_v24, %v606_v0 }
  0xcb   : > { %1533 = vtanh.f32 %v640_v31  ;;  %v647_v28 = vadd.f32 %v629_v24, %v607_v1 }
  0xcc   : > { %1535 = vtanh.f32 %v641_v62  ;;  %v694_v38 = vpop.permute.xlu0 %693 }
  0xcd   : > { %1537 = vtanh.f32 %v642_v20  ;;  %v679_v59 = vpop.permute.xlu1 %678 }
  0xce   : > { %1539 = vtanh.f32 %v643_v57 }
  0xcf   : > { %1541 = vtanh.f32 %v644_v22 }
  0xd0   : > { %1543 = vtanh.f32 %v645_v4 }
  0xd1   : > { %v1526_v5 = vpop.eup %1525  ;;  %1545 = vtanh.f32 %v646_v25  ;;  %v689_v13 = vpop.permute.xlu1 %688 }
  0xd2   : > { %v1528_v61 = vpop.eup %1527  ;;  %1547 = vtanh.f32 %v647_v28 }
  0xd3   : > { %v1530_v17 = vpop.eup %1529 }
  0xd4   : > { %v1532_v32 = vpop.eup %1531 }
  0xd5   : > { %v1534_v46 = vpop.eup %1533 }
  0xd6   : > { %v1536_v18 = vpop.eup %1535  ;;  %v1416_v19 = vpack.c.bf16 %v1534_v46, %v1518_v3 }
  0xd7   : > { %v1538_v26 = vpop.eup %1537  ;;  %v1414_v2 = vpack.c.bf16 %v1536_v18, %v1520_v21 }
  0xd8   : > { %v1540_v39 = vpop.eup %1539  ;;  %v1424_v27 = vpack.c.bf16 %v1538_v26, %v1522_v45 }
  0xd9   : > { %v1542_v41 = vpop.eup %1541  ;;  %1415 = vmatprep.subr.bf16.mxu0 %v1414_v2  ;;  %v1422_v43 = vpack.c.bf16 %v1540_v39, %v1524_v60 }
  0xda   : > { %v1544_v40 = vpop.eup %1543  ;;  %1417 = vmatpush1.bf16.msra.mxu0 %v1416_v19  ;;  %v1420_v44 = vpack.c.bf16 %v1526_v5, %v1542_v41 }
  0xdb   : > { %v1546_v48 = vpop.eup %1545  ;;  %1423 = vmatprep.subr.bf16.mxu1 %v1422_v43  ;;  %v1418_v49 = vpack.c.bf16 %v1528_v61, %v1544_v40 }
  0xdc   : > { %v1548_v33 = vpop.eup %1547  ;;  %1425 = vmatpush1.bf16.msra.mxu1 %v1424_v27  ;;  %v1428_v50 = vpack.c.bf16 %v1530_v17, %v1546_v48 }
  0xdd   : > { %1419 = vmatprep.subr.bf16.mxu0 %v1418_v49  ;;  %v1426_v36 = vpack.c.bf16 %v1532_v32, %v1548_v33 }
  0xde   : > { %1421 = vmatpush1.bf16.msra.mxu0 %v1420_v44 }
  0xdf   : > { %1427 = vmatprep.subr.bf16.mxu1 %v1426_v36 }
  0xe0   : > { %1429 = vmatpush1.bf16.msra.mxu1 %v1428_v50 }
  0xe1   : > { %1382 = vmatmul.mubr.msk.f32.vlgmr.msra.gmra.mrb[0].mxu0 %vm696_vm0, %v668_v52 }
  0xe2   : > { %779 = vmatprep.mubr.f32.mxu0 %v2080_v53 }
  0xe3   : > { %1386 = vmatmul.mubr.msk.f32.vlgmr.msra.gmra.mrb[0].mxu1 %vm696_vm0, %v668_v52 }
  0xe4   : > { %868 = vmatprep.mubr.f32.mxu1 %v2080_v53 }
  0xe5   : > { %1383 = vmatmul.mubr.msk.f32.gmra.mrb[2].mxu0 %vm696_vm0, %v669_v54 }
  0xe6   : > { %785 = vmatprep.mubr.f32.mxu0 %v2080_v53 }
  0xe7   : > { %1387 = vmatmul.mubr.msk.f32.gmra.mrb[2].mxu1 %vm696_vm0, %v669_v54  ;;  %v1390_v54 = vld [vmem:[%s2053_s3 + $0x20] sm:$0xff] }
  0xe8   : > { %874 = vmatprep.mubr.f32.mxu1 %v2080_v53 }
  0xe9   : > { %1384 = vmatmul.mubr.msk.f32.gmra.mrb[4].mxu0 %vm696_vm0, %v670_v55 }
  0xea   : > { %791 = vmatprep.mubr.f32.mxu0 %v2080_v53 }
  0xeb   : > { %1388 = vmatmul.mubr.msk.f32.gmra.mrb[4].mxu1 %vm696_vm0, %v670_v55  ;;  %v1391_v55 = vld [vmem:[%s2053_s3 + $0x28] sm:$0xff] }
  0xec   : > { %880 = vmatprep.mubr.f32.mxu1 %v2080_v53 }
  0xed   : > { %1385 = vmatmul.mubr.msk.f32.gmra.mrb[6].mxu0 %vm696_vm0, %v671_v58 }
  0xee   : > { %1009 = vmatprep.mubr.f32.mxu0 %v2080_v53 }
  0xef   : > { %1389 = vmatmul.mubr.msk.f32.gmra.mrb[6].mxu1 %vm696_vm0, %v671_v58  ;;  %v1392_v58 = vld [vmem:[%s2053_s3 + $0x30] sm:$0xff] }
  0xf0   : > { %1098 = vmatprep.mubr.f32.mxu1 %v2080_v53 }
 0x1b4   : > { %v775_v34 = vpop.f32.mrb[0].mxu0 }
 0x1b5   : > { %v776_v9 = vadd.f32 %v775_v34, %v679_v59  ;;  %v777_v10 = vpop.f32.mrb[1].mxu0  ;;  %v916_v34 = vpop.permute.xlu1 %915 }
 0x1b6   : > { %v864_v29 = vpop.f32.mrb[0].mxu1  ;;  %v778_v35 = vadd.f32 %v777_v10, %v679_v59 }
 0x1b7   : > { %1549 = vtanh.f32 %v776_v9  ;;  %v865_v51 = vadd.f32 %v864_v29, %v679_v59  ;;  %v866_v14 = vpop.f32.mrb[1].mxu1 }
 0x1b8   : > { %1551 = vtanh.f32 %v778_v35  ;;  %v867_v15 = vadd.f32 %v866_v14, %v679_v59  ;;  %v781_v37 = vpop.f32.mrb[2].mxu0  ;;  %v1393_v59 = vld [vmem:[%s2053_s3 + $0x38] sm:$0xff] }
 0x1b9   : > { %1553 = vtanh.f32 %v865_v51  ;;  %v782_v42 = vadd.f32 %v781_v37, %v684_v6  ;;  %v783_v30 = vpop.f32.mrb[3].mxu0 }
 0x1ba   : > { %1555 = vtanh.f32 %v867_v15  ;;  %v870_v23 = vpop.f32.mrb[2].mxu1  ;;  %v784_v11 = vadd.f32 %v783_v30, %v684_v6  ;;  %v921_v15 = vpop.permute.xlu0 %920 }
 0x1bb   : > { %1557 = vtanh.f32 %v782_v42  ;;  %v871_v7 = vadd.f32 %v870_v23, %v684_v6  ;;  %v872_v12 = vpop.f32.mrb[3].mxu1 }
 0x1bc   : > { %1559 = vtanh.f32 %v784_v11  ;;  %v873_v31 = vadd.f32 %v872_v12, %v684_v6  ;;  %v787_v56 = vpop.f32.mrb[4].mxu0 }
 0x1bd   : > { %1561 = vtanh.f32 %v871_v7  ;;  %v788_v47 = vadd.f32 %v787_v56, %v689_v13  ;;  %v789_v62 = vpop.f32.mrb[5].mxu0 }
 0x1be   : > { %1563 = vtanh.f32 %v873_v31  ;;  %v876_v3 = vpop.f32.mrb[4].mxu1  ;;  %v790_v8 = vadd.f32 %v789_v62, %v689_v13 }
 0x1bf   : > { %1565 = vtanh.f32 %v788_v47  ;;  %v877_v20 = vadd.f32 %v876_v3, %v689_v13  ;;  %v878_v24 = vpop.f32.mrb[5].mxu1 }
 0x1c0   : > { %1567 = vtanh.f32 %v790_v8  ;;  %v879_v21 = vadd.f32 %v878_v24, %v689_v13  ;;  %v793_v63 = vpop.f32.mrb[6].mxu0  ;;  %v926_v13 = vpop.permute.xlu1 %925 }
 0x1c1   : > { %v1550_v57 = vpop.eup %1549  ;;  %1569 = vtanh.f32 %v877_v20  ;;  %v794_v16 = vadd.f32 %v793_v63, %v694_v38  ;;  %v795_v0 = vpop.f32.mrb[7].mxu0 }
 0x1c2   : > { %v1552_v22 = vpop.eup %1551  ;;  %1571 = vtanh.f32 %v879_v21  ;;  %v882_v45 = vpop.f32.mrb[6].mxu1  ;;  %v796_v1 = vadd.f32 %v795_v0, %v694_v38 }
 0x1c3   : > { %v1554_v4 = vpop.eup %1553  ;;  %1573 = vtanh.f32 %v794_v16  ;;  %v883_v25 = vadd.f32 %v882_v45, %v694_v38  ;;  %v884_v60 = vpop.f32.mrb[7].mxu1 }
 0x1c4   : > { %v1556_v28 = vpop.eup %1555  ;;  %1575 = vtanh.f32 %v796_v1  ;;  %v885_v5 = vadd.f32 %v884_v60, %v694_v38  ;;  %v931_v38 = vpop.permute.xlu0 %930 }
 0x1c5   : > { %v1558_v61 = vpop.eup %1557  ;;  %1577 = vtanh.f32 %v883_v25 }
 0x1c6   : > { %v1560_v17 = vpop.eup %1559  ;;  %1579 = vtanh.f32 %v885_v5  ;;  %v1432_v32 = vpack.c.bf16 %v1558_v61, %v1550_v57 }
 0x1c7   : > { %v1562_v46 = vpop.eup %1561  ;;  %v1430_v18 = vpack.c.bf16 %v1560_v17, %v1552_v22 }
 0x1c8   : > { %v1564_v19 = vpop.eup %1563  ;;  %v1440_v26 = vpack.c.bf16 %v1562_v46, %v1554_v4 }
 0x1c9   : > { %v1566_v2 = vpop.eup %1565  ;;  %1431 = vmatprep.subr.bf16.mxu0 %v1430_v18  ;;  %v1438_v39 = vpack.c.bf16 %v1564_v19, %v1556_v28 }
 0x1ca   : > { %v1568_v27 = vpop.eup %1567  ;;  %1433 = vmatpush1.bf16.msra.mxu0 %v1432_v32 }
 0x1cb   : > { %v1570_v41 = vpop.eup %1569  ;;  %1439 = vmatprep.subr.bf16.mxu1 %v1438_v39 }
 0x1cc   : > { %v1572_v43 = vpop.eup %1571  ;;  %1441 = vmatpush1.bf16.msra.mxu1 %v1440_v26 }
 0x1cd   : > { %v1574_v40 = vpop.eup %1573 }
 0x1ce   : > { %v1576_v44 = vpop.eup %1575  ;;  %v1436_v48 = vpack.c.bf16 %v1574_v40, %v1566_v2 }
 0x1cf   : > { %v1578_v49 = vpop.eup %1577  ;;  %v1434_v33 = vpack.c.bf16 %v1576_v44, %v1568_v27 }
 0x1d0   : > { %v1580_v50 = vpop.eup %1579  ;;  %v1444_v36 = vpack.c.bf16 %v1578_v49, %v1570_v41 }
 0x1d1   : > { %1435 = vmatprep.subr.bf16.mxu0 %v1434_v33  ;;  %v1442_v52 = vpack.c.bf16 %v1580_v50, %v1572_v43 }
 0x1d2   : > { %1437 = vmatpush1.bf16.msra.mxu0 %v1436_v48 }
 0x1d3   : > { %1443 = vmatprep.subr.bf16.mxu1 %v1442_v52 }
 0x1d4   : > { %1445 = vmatpush1.bf16.msra.mxu1 %v1444_v36 }
 0x1d5   : > { %1398 = vmatmul.mubr.msk.f32.vlgmr.msra.gmra.mrb[8].mxu0 %vm696_vm0, %v1390_v54 }
 0x1d6   : > { %1015 = vmatprep.mubr.f32.mxu0 %v2080_v53 }
 0x1d7   : > { %1402 = vmatmul.mubr.msk.f32.vlgmr.msra.gmra.mrb[8].mxu1 %vm696_vm0, %v1390_v54  ;;  %v1139_v54 = vld [vmem:[%s2055_s5] sm:$0x7] }
 0x1d8   : > { %1104 = vmatprep.mubr.f32.mxu1 %v2080_v53 }
 0x1d9   : > { %1399 = vmatmul.mubr.msk.f32.gmra.mrb[10].mxu0 %vm696_vm0, %v1391_v55 }
 0x1da   : > { %1021 = vmatprep.mubr.f32.mxu0 %v2080_v53 }
 0x1db   : > { %1403 = vmatmul.mubr.msk.f32.gmra.mrb[10].mxu1 %vm696_vm0, %v1391_v55  ;;  %v1144_v55 = vpop.permute.xlu1 %1143 }
 0x1dc   : > { %1110 = vmatprep.mubr.f32.mxu1 %v2080_v53 }
 0x1dd   : > { %1400 = vmatmul.mubr.msk.f32.gmra.mrb[12].mxu0 %vm696_vm0, %v1392_v58 }
 0x1de   : > { %1027 = vmatprep.mubr.f32.mxu0 %v2080_v53 }
 0x1df   : > { %1404 = vmatmul.mubr.msk.f32.gmra.mrb[12].mxu1 %vm696_vm0, %v1392_v58 }
 0x1e0   : > { %1116 = vmatprep.mubr.f32.mxu1 %v2080_v53 }
 0x1e1   : > { %1401 = vmatmul.mubr.msk.f32.gmra.mrb[14].mxu0 %vm696_vm0, %v1393_v59 }
 0x1e2   : > { %1213 = vmatprep.mubr.f32.mxu0 %v2080_v53 }
 0x1e3   : > { %1405 = vmatmul.mubr.msk.f32.gmra.mrb[14].mxu1 %vm696_vm0, %v1393_v59 }
 0x1e4   : > { %1284 = vmatprep.mubr.f32.mxu1 %v2080_v53 }
 0x2a8   : > { %v1011_v9 = vpop.f32.mrb[8].mxu0 }
 0x2a9   : > { %v1012_v10 = vadd.f32 %v1011_v9, %v916_v34  ;;  %v1013_v29 = vpop.f32.mrb[9].mxu0 }
 0x2aa   : > { %v1100_v35 = vpop.f32.mrb[8].mxu1  ;;  %v1014_v51 = vadd.f32 %v1013_v29, %v916_v34 }
 0x2ab   : > { %1581 = vtanh.f32 %v1012_v10  ;;  %v1101_v14 = vadd.f32 %v1100_v35, %v916_v34  ;;  %v1102_v6 = vpop.f32.mrb[9].mxu1 }
 0x2ac   : > { %1583 = vtanh.f32 %v1014_v51  ;;  %v1103_v37 = vadd.f32 %v1102_v6, %v916_v34  ;;  %v1017_v42 = vpop.f32.mrb[10].mxu0 }
 0x2ad   : > { %1585 = vtanh.f32 %v1101_v14  ;;  %v1018_v30 = vadd.f32 %v1017_v42, %v921_v15  ;;  %v1019_v23 = vpop.f32.mrb[11].mxu0 }
 0x2ae   : > { %1587 = vtanh.f32 %v1103_v37  ;;  %v1106_v11 = vpop.f32.mrb[10].mxu1  ;;  %v1020_v7 = vadd.f32 %v1019_v23, %v921_v15 }
 0x2af   : > { %1589 = vtanh.f32 %v1018_v30  ;;  %v1107_v53 = vadd.f32 %v1106_v11, %v921_v15  ;;  %v1108_v12 = vpop.f32.mrb[11].mxu1 }
 0x2b0   : > { %1591 = vtanh.f32 %v1020_v7  ;;  %v1109_v31 = vadd.f32 %v1108_v12, %v921_v15  ;;  %v1023_v56 = vpop.f32.mrb[12].mxu0 }
 0x2b1   : > { %1593 = vtanh.f32 %v1107_v53  ;;  %v1024_v47 = vadd.f32 %v1023_v56, %v926_v13  ;;  %v1025_v62 = vpop.f32.mrb[13].mxu0 }
 0x2b2   : > { %1595 = vtanh.f32 %v1109_v31  ;;  %v1112_v3 = vpop.f32.mrb[12].mxu1  ;;  %v1026_v8 = vadd.f32 %v1025_v62, %v926_v13 }
 0x2b3   : > { %1597 = vtanh.f32 %v1024_v47  ;;  %v1113_v20 = vadd.f32 %v1112_v3, %v926_v13  ;;  %v1114_v24 = vpop.f32.mrb[13].mxu1 }
 0x2b4   : > { %1599 = vtanh.f32 %v1026_v8  ;;  %v1115_v21 = vadd.f32 %v1114_v24, %v926_v13  ;;  %v1029_v63 = vpop.f32.mrb[14].mxu0 }
 0x2b5   : > { %v1582_v57 = vpop.eup %1581  ;;  %1601 = vtanh.f32 %v1113_v20  ;;  %v1030_v16 = vadd.f32 %v1029_v63, %v931_v38  ;;  %v1031_v0 = vpop.f32.mrb[15].mxu0 }
 0x2b6   : > { %v1584_v22 = vpop.eup %1583  ;;  %1603 = vtanh.f32 %v1115_v21  ;;  %v1118_v45 = vpop.f32.mrb[14].mxu1  ;;  %v1032_v1 = vadd.f32 %v1031_v0, %v931_v38 }
 0x2b7   : > { %v1586_v4 = vpop.eup %1585  ;;  %1605 = vtanh.f32 %v1030_v16  ;;  %v1119_v25 = vadd.f32 %v1118_v45, %v931_v38  ;;  %v1120_v60 = vpop.f32.mrb[15].mxu1 }
 0x2b8   : > { %v1588_v28 = vpop.eup %1587  ;;  %1607 = vtanh.f32 %v1032_v1  ;;  %v1121_v5 = vadd.f32 %v1120_v60, %v931_v38 }
 0x2b9   : > { %v1590_v61 = vpop.eup %1589  ;;  %1609 = vtanh.f32 %v1119_v25 }
 0x2ba   : > { %v1592_v17 = vpop.eup %1591  ;;  %1611 = vtanh.f32 %v1121_v5  ;;  %v1448_v32 = vpack.c.bf16 %v1590_v61, %v1582_v57 }
 0x2bb   : > { %v1594_v46 = vpop.eup %1593  ;;  %v1446_v18 = vpack.c.bf16 %v1592_v17, %v1584_v22 }
 0x2bc   : > { %v1596_v19 = vpop.eup %1595  ;;  %v1456_v26 = vpack.c.bf16 %v1594_v46, %v1586_v4 }
 0x2bd   : > { %v1598_v2 = vpop.eup %1597  ;;  %1447 = vmatprep.subr.bf16.mxu0 %v1446_v18  ;;  %v1454_v39 = vpack.c.bf16 %v1596_v19, %v1588_v28 }
 0x2be   : > { %v1600_v27 = vpop.eup %1599  ;;  %1449 = vmatpush1.bf16.msra.mxu0 %v1448_v32 }
 0x2bf   : > { %v1602_v41 = vpop.eup %1601  ;;  %1455 = vmatprep.subr.bf16.mxu1 %v1454_v39 }
 0x2c0   : > { %v1604_v43 = vpop.eup %1603  ;;  %1457 = vmatpush1.bf16.msra.mxu1 %v1456_v26 }
 0x2c1   : > { %v1606_v40 = vpop.eup %1605 }
 0x2c2   : > { %v1608_v44 = vpop.eup %1607  ;;  %v1452_v48 = vpack.c.bf16 %v1606_v40, %v1598_v2 }
 0x2c3   : > { %v1610_v49 = vpop.eup %1609  ;;  %v1450_v33 = vpack.c.bf16 %v1608_v44, %v1600_v27 }
 0x2c4   : > { %v1612_v50 = vpop.eup %1611  ;;  %v1460_v36 = vpack.c.bf16 %v1610_v49, %v1602_v41 }
 0x2c5   : > { %1451 = vmatprep.subr.bf16.mxu0 %v1450_v33  ;;  %v1458_v52 = vpack.c.bf16 %v1612_v50, %v1604_v43 }
 0x2c6   : > { %1453 = vmatpush1.bf16.msra.mxu0 %v1452_v48 }
 0x2c7   : > { %1459 = vmatprep.subr.bf16.mxu1 %v1458_v52 }
 0x2c8   : > { %1461 = vmatpush1.bf16.msra.mxu1 %v1460_v36 }
 0x2c9   : > { %1406 = vmatmul.mubr.msk.f32.vlgmr.msra.gmra.mrb[16].mxu0 %vm696_vm0, %v1139_v54 }
 0x2cb   : > { %1407 = vmatmul.mubr.msk.f32.vlgmr.msra.gmra.mrb[16].mxu1 %vm696_vm0, %v1139_v54 }
 0x39c   : > { %v1215_v58 = vpop.f32.mrb[16].mxu0 }
 0x39d   : > { %v1216_v59 = vadd.f32 %v1215_v58, %v1144_v55  ;;  %v1217_v34 = vpop.f32.mrb[17].mxu0 }
 0x39e   : > { %v1286_v9 = vpop.f32.mrb[16].mxu1  ;;  %v1218_v10 = vadd.f32 %v1217_v34, %v1144_v55 }
 0x39f   : > { %v1287_v29 = vadd.f32 %v1286_v9, %v1144_v55  ;;  %v1288_v35 = vpop.f32.mrb[17].mxu1 }
 0x3a0   : > { %v1295_v51 = vcombine.low %v1216_v59, %v1218_v10  ;;  %v1289_v14 = vadd.f32 %v1288_v35, %v1144_v55 }
 0x3a2   : > { %1299 = vst [vmem:[%s272_s17] sm:$0x77] %v1295_v51  ;;  %v1296_v6 = vcombine.low %v1287_v29, %v1289_v14 }
 0x3a4   : > { %1300 = vst [vmem:[%s272_s17 + $0x8] sm:$0x77] %v1296_v6 }
 0x3a5   : > { %1626 = shalt.err (!%p1623_p3)
}
 0x3a6   : > { %s1627_s9 = scalar_lea.hbm %s2008_s21, 256  ;;  %s1631_s15 = scalar_lea.hbm %s2057_s7, 512 }
 0x3a7   : > { %p1628_p4 = scmp.ne.s32.totalorder %s2008_s21, %s1627_s9  ;;  %p1632_p9 = scmp.lt.u32.totalorder %s2008_s21, %s2057_s7 }
 0x3a8   : > { %p1633_p10 = scmp.lt.u32.totalorder %s1631_s15, %s1627_s9  ;;  %p1635_p12 = scmp.lt.u32.totalorder %s1627_s9, %s2008_s21 }
 0x3a9   : > { %p1629_p7 = pnand %p1628_p4, %p1761_p5 }
 0x3aa   : > { %p1634_p11 = por %p1633_p10, %p1632_p9 }
 0x3ab   : > { %p1630_p8 = pneg %p1629_p7 }
 0x3ac   : > { %p1636_p13 = por %p1635_p12, %p1634_p11 }
 0x3ae   : > { %p1637_p0 = pnand %p1636_p13, %p1630_p8 }
 0x3b0   : > { %1640 = shalt.err (!%p1637_p0)
}
 0x3b1   : > { %1462 = dma.vmem_to_hbm [thread:$0]  (%p1761_p5), %s2010_s18, 256, %s2008_s21, %s1302_s22  }
 0x3b2 PF: > { %p1468_p1 = scmp.ge.s32.totalorder %s1675_s27, 2  ;;  %s1328_s19 = sand.u32 1, %s1663_s24  }
 0x3b3   : > { %s1329_s20 = scalar_lea.sflag [#allocation3], %s1328_s19 }
 0x3b4   : > { %p1465_p2 = pnand %p1468_p1, %p1765_p6 }
 0x3b6   : > { %1658 = dma.done.wait (!%p1465_p2), %s1329_s20, 256  }
 0x3b7   : > { %1660 = vsyncadd (!%p1465_p2), %s1329_s20, 4294967040  ;;  %p17_p3 = scmp.ge.s32.totalorder %s1748_s30, 4   ;;  %s2081_s24 = smov %s1667_s25 }
 0x3b8   : > { %s2082_s25 = smov %s1671_s26  ;;  %s2083_s26 = smov %s1759_s10 }
 0x3b9   : > { %s2084_s27 = smov %s1748_s30  ;;  %19 = sbr.rel (!%p17_p3) target bundleno = 3 (0x3), region = 85 }
 0x3c0   :  { %1334 = vsyncpa [#allocation3], 1 }
 0x3c1   :  { %1336 = vsyncpa [#allocation3 + $0x1], 1 }

</bundles_post_ra>
